<compile_context>
chip_gen: v5e
topology: v5e:2x2
jax: 0.10.0
libtpu: 0.0.40
codegen_flags: <defaults>
</compile_context>

<pallas_src>
import functools
import math

import jax
import jax.numpy as jnp
from jax.experimental import pallas as pl
from jax.experimental.pallas import tpu as pltpu


def classblock_kernel(x_ref, w1_ref, b1_ref, w2_ref, b2_ref, o_ref, *, ew_dtype):
    # --- Linear(input_dim, H) with eval-BN folded in (host-side fold) -------
    # x cast to bf16 in-kernel (D is tiny); bf16 MXU operands, f32 accumulation.
    xb = x_ref[...].astype(jnp.bfloat16)
    h = jnp.dot(xb, w1_ref[...], preferred_element_type=jnp.float32)

    # --- bias + LeakyReLU(0.1) in the chip's preferred elementwise dtype ----
    h = h.astype(ew_dtype) + b1_ref[...]
    h = jnp.maximum(h, 0.1 * h)            # == LeakyReLU(0.1) since 0.1 > 0

    # --- Dropout(p=0.5): identity in eval mode -------------------------------

    # --- classifier Linear(H, 1) on the MXU (huge slack after the K=D dot) --
    logits = jnp.dot(h, w2_ref[...], preferred_element_type=jnp.float32)
    logits = logits + b2_ref[...]

    # --- numerically stable Sigmoid on the tiny [TB, 1] logits tile ----------
    z = jnp.exp(-jnp.abs(logits))
    sig = jnp.where(logits >= 0.0, 1.0 / (1.0 + z), z / (1.0 + z))
    o_ref[...] = sig.astype(o_ref.dtype)


def _elementwise_dtype():
    kind = jax.devices()[0].device_kind.lower()
    # v5-and-earlier TensorCores have no bf16 VALU -> bf16 elementwise gains
    # nothing there (extra converts only).  v6e / v7x VALUs are bf16-native.
    if any(tag in kind for tag in ("v2", "v3", "v4", "v5")):
        return jnp.float32
    return jnp.bfloat16


def _min_grid_blocks():
    kind = jax.devices()[0].device_kind.lower()
    # v5e / v6e: 1 TensorCore per chip.  v7x-class parts have 2, so the grid
    # needs >= 2 blocks for dimension_semantics=("parallel",) to shard.
    if any(tag in kind for tag in ("v5", "v6")):
        return 1
    return 2


def class_block_forward(x, params, *, block_b=1024):
    """Eval-mode ClassBlock forward.  x: [B, input_dim] float32."""
    B, D = x.shape
    H = params["w1"].shape[1]
    C = params["w2"].shape[1]
    assert C == 1, "kernel specialises the class_num == 1 classifier head"

    ew_dtype = _elementwise_dtype()
    ew_bytes = jnp.dtype(ew_dtype).itemsize

    # ---- Fold eval-mode BatchNorm1d into the first Linear (host-side) ------
    scale = params["gamma"] * jax.lax.rsqrt(params["running_var"] + 1e-5)  # [1,H]
    w1f = (params["w1"] * scale).astype(jnp.bfloat16)                       # [D,H]
    b1f = ((params["b1"] - params["running_mean"]) * scale
           + params["beta"]).astype(ew_dtype)                               # [1,H]
    w2c = params["w2"].astype(ew_dtype)                                     # [H,1]
    b2 = params["b2"].astype(jnp.float32)                                   # [1,1]

    # ---- Batch tiling: TB rows per grid step, sublane-aligned ---------------
    min_blocks = _min_grid_blocks() if B >= 16 else 1
    nb_target = max(min_blocks, -(-B // block_b))
    TB = -(-B // nb_target)                 # ceil(B / nb_target)
    TB = max(8, -(-TB // 8) * 8)            # round up to a multiple of 8
    nb = -(-B // TB)
    Bp = nb * TB
    if Bp != B:
        x = jnp.pad(x, ((0, Bp - B), (0, 0)))

    # ---- VMEM guardrail (only kicks in for large D/H/TB) --------------------
    vmem_est = (2 * TB * D * 4                # x tile, double-buffered, f32
                + 2 * D * H * 2               # w1 bf16 (default double-buffer)
                + 2 * 2 * H * ew_bytes        # b1 + w2
                + 2 * TB * 4                  # output tile
                + TB * H * (4 + ew_bytes))    # f32 accumulator + elementwise temp
    compiler_kwargs = dict(dimension_semantics=("parallel",))
    if vmem_est > 16 * 1024 * 1024:
        compiler_kwargs["vmem_limit_bytes"] = min(int(vmem_est * 1.5),
                                                  64 * 1024 * 1024)

    kernel = functools.partial(classblock_kernel, ew_dtype=ew_dtype)
    out = pl.pallas_call(
        kernel,
        out_shape=jax.ShapeDtypeStruct((Bp, C), jnp.float32),
        grid=(nb,),
        in_specs=[
            pl.BlockSpec((TB, D), lambda i: (i, 0)),   # x tile    (pipelined)
            pl.BlockSpec((D, H), lambda i: (0, 0)),    # folded w1 (resident)
            pl.BlockSpec((1, H), lambda i: (0, 0)),    # folded b1 (resident)
            pl.BlockSpec((H, C), lambda i: (0, 0)),    # w2 column (resident)
            pl.BlockSpec((1, C), lambda i: (0, 0)),    # b2        (resident)
        ],
        out_specs=pl.BlockSpec((TB, C), lambda i: (i, 0)),
        compiler_params=pltpu.CompilerParams(**compiler_kwargs),
    )(x, w1f, b1f, w2c, b2)
    return out[:B]


def init_params(key, input_dim, num_bottleneck=512, class_num=1):
    """PyTorch-default-style Linear init; non-trivial BN state so the folded
    BN path is actually exercised by the self-test."""
    k1, k2, k3, k4, k5, k6, k7, k8 = jax.random.split(key, 8)
    bound1 = 1.0 / math.sqrt(input_dim)
    bound2 = 1.0 / math.sqrt(num_bottleneck)
    return {
        # Linear(input_dim, num_bottleneck); stored as [D, H] so x @ w1
        "w1": jax.random.uniform(k1, (input_dim, num_bottleneck),
                                 jnp.float32, -bound1, bound1),
        "b1": jax.random.uniform(k2, (1, num_bottleneck),
                                 jnp.float32, -bound1, bound1),
        # BatchNorm1d(num_bottleneck) -- random state (not identity)
        "gamma": jax.random.uniform(k5, (1, num_bottleneck),
                                    jnp.float32, 0.5, 1.5),
        "beta": 0.1 * jax.random.normal(k6, (1, num_bottleneck), jnp.float32),
        "running_mean": 0.5 * jax.random.normal(k7, (1, num_bottleneck),
                                                jnp.float32),
        "running_var": jax.random.uniform(k8, (1, num_bottleneck),
                                          jnp.float32, 0.5, 1.5),
        # Linear(num_bottleneck, class_num); stored as [H, C]
        "w2": jax.random.uniform(k3, (num_bottleneck, class_num),
                                 jnp.float32, -bound2, bound2),
        "b2": jax.random.uniform(k4, (1, class_num),
                                 jnp.float32, -bound2, bound2),
    }


def reference_forward(x, p):
    """Plain-JAX f32 reference following the PyTorch module exactly (eval)."""
    h = x @ p["w1"] + p["b1"]
    h = (h - p["running_mean"]) * jax.lax.rsqrt(p["running_var"] + 1e-5)
    h = h * p["gamma"] + p["beta"]
    h = jnp.where(h >= 0.0, h, 0.1 * h)
    logits = h @ p["w2"] + p["b2"]
    return jax.nn.sigmoid(logits)


if __name__ == "__main__":
    key = jax.random.PRNGKey(0)
    kx, kp = jax.random.split(key)

    B, D, H, C = 8, 32, 512, 1   # batch, input_dim, num_bottleneck, class_num
    x = jax.random.normal(kx, (B, D), jnp.float32)
    params = init_params(kp, D, num_bottleneck=H, class_num=C)

    out = jax.block_until_ready(class_block_forward(x, params))
    ref = reference_forward(x, params)

    assert out.shape == (B, C), out.shape
    # Tolerance covers bf16 MXU operands and (on v6e/v7x) the bf16 elementwise
    # stage; output is a sigmoid probability in [0, 1].
    assert jnp.allclose(out, ref, atol=2e-2, rtol=2e-2), (out, ref)

    print("KERNEL_OK")
</pallas_src>

<mosaic_0001>
module attributes {stable_mosaic.version = 11 : i64} {
  func.func @classblock_kernel(%arg0: i32, %arg1: memref<8x32xf32, #tpu.memory_space<vmem>>, %arg2: memref<32x512xbf16, #tpu.memory_space<vmem>>, %arg3: memref<1x512xbf16, #tpu.memory_space<vmem>>, %arg4: memref<512x1xbf16, #tpu.memory_space<vmem>>, %arg5: memref<1x1xf32, #tpu.memory_space<vmem>>, %arg6: memref<8x1xf32, #tpu.memory_space<vmem>>) attributes {dimension_semantics = [#tpu.dimension_semantics<parallel>], iteration_bounds = array<i64: 1>, scalar_prefetch = 0 : i64, scratch_operands = 0 : i64, tpu.core_type = #tpu.core_type<tc>, window_params = [{transform_indices = @transform_0, window_bounds = array<i64: 8, 32>}, {pipeline_mode = #tpu.pipeline_mode<synchronous>, transform_indices = @transform_1, window_bounds = array<i64: 32, 512>}, {pipeline_mode = #tpu.pipeline_mode<synchronous>, transform_indices = @transform_2, window_bounds = array<i64: 1, 512>}, {pipeline_mode = #tpu.pipeline_mode<synchronous>, transform_indices = @transform_3, window_bounds = array<i64: 512, 1>}, {pipeline_mode = #tpu.pipeline_mode<synchronous>, transform_indices = @transform_4, window_bounds = array<i64: 1, 1>}, {transform_indices = @transform_5, window_bounds = array<i64: 8, 1>}]} {
    %c0 = arith.constant 0 : index
    %c0_0 = arith.constant 0 : index
    %0 = vector.load %arg1[%c0, %c0_0] : memref<8x32xf32, #tpu.memory_space<vmem>>, vector<8x32xf32>
    %1 = arith.truncf %0 : vector<8x32xf32> to vector<8x32xbf16>
    %c0_1 = arith.constant 0 : index
    %c0_2 = arith.constant 0 : index
    %2 = vector.load %arg2[%c0_1, %c0_2] : memref<32x512xbf16, #tpu.memory_space<vmem>>, vector<32x512xbf16>
    %cst = arith.constant dense<0.000000e+00> : vector<8x512xf32>
    %3 = tpu.matmul %1, %2, %cst {dimension_numbers = #tpu.dot_dimension_numbers<[1], [0], [0], [1], [0, 0, 1, 1], [], []>} : vector<8x32xbf16>, vector<32x512xbf16>, vector<8x512xf32> -> vector<8x512xf32>
    %4 = arith.truncf %3 : vector<8x512xf32> to vector<8x512xbf16>
    %c0_3 = arith.constant 0 : index
    %c0_4 = arith.constant 0 : index
    %5 = vector.load %arg3[%c0_3, %c0_4] : memref<1x512xbf16, #tpu.memory_space<vmem>>, vector<1x512xbf16>
    %6 = vector.broadcast %5 : vector<1x512xbf16> to vector<8x512xbf16>
    %7 = arith.addf %4, %6 : vector<8x512xbf16>
    %cst_5 = arith.constant 1.000980e-01 : bf16
    %8 = vector.broadcast %cst_5 : bf16 to vector<8x512xbf16>
    %9 = arith.mulf %8, %7 : vector<8x512xbf16>
    %10 = arith.maximumf %7, %9 : vector<8x512xbf16>
    %c0_6 = arith.constant 0 : index
    %c0_7 = arith.constant 0 : index
    %11 = vector.load %arg4[%c0_6, %c0_7] : memref<512x1xbf16, #tpu.memory_space<vmem>>, vector<512x1xbf16>
    %cst_8 = arith.constant dense<0.000000e+00> : vector<8x1xf32>
    %12 = tpu.matmul %10, %11, %cst_8 {dimension_numbers = #tpu.dot_dimension_numbers<[1], [0], [0], [1], [0, 0, 1, 1], [], []>} : vector<8x512xbf16>, vector<512x1xbf16>, vector<8x1xf32> -> vector<8x1xf32>
    %c0_9 = arith.constant 0 : index
    %c0_10 = arith.constant 0 : index
    %13 = vector.load %arg5[%c0_9, %c0_10] : memref<1x1xf32, #tpu.memory_space<vmem>>, vector<1x1xf32>
    %14 = vector.broadcast %13 : vector<1x1xf32> to vector<8x1xf32>
    %15 = arith.addf %12, %14 : vector<8x1xf32>
    %16 = math.absf %15 : vector<8x1xf32>
    %cst_11 = arith.constant 0.000000e+00 : f32
    %17 = vector.broadcast %cst_11 : f32 to vector<8x1xf32>
    %18 = arith.subf %17, %16 : vector<8x1xf32>
    %19 = math.exp %18 : vector<8x1xf32>
    %cst_12 = arith.constant 0.000000e+00 : f32
    %20 = vector.broadcast %cst_12 : f32 to vector<8x1xf32>
    %21 = arith.cmpf oge, %15, %20 : vector<8x1xf32>
    %cst_13 = arith.constant 1.000000e+00 : f32
    %22 = vector.broadcast %cst_13 : f32 to vector<8x1xf32>
    %23 = arith.addf %22, %19 : vector<8x1xf32>
    %cst_14 = arith.constant 1.000000e+00 : f32
    %24 = vector.broadcast %cst_14 : f32 to vector<8x1xf32>
    %25 = arith.divf %24, %23 : vector<8x1xf32>
    %cst_15 = arith.constant 1.000000e+00 : f32
    %26 = vector.broadcast %cst_15 : f32 to vector<8x1xf32>
    %27 = arith.addf %26, %19 : vector<8x1xf32>
    %28 = arith.divf %19, %27 : vector<8x1xf32>
    %29 = arith.select %21, %25, %28 : vector<8x1xi1>, vector<8x1xf32>
    %c0_16 = arith.constant 0 : index
    %c0_17 = arith.constant 0 : index
    %30 = vector.load %arg6[%c0_16, %c0_17] : memref<8x1xf32, #tpu.memory_space<vmem>>, vector<8x1xf32>
    tpu.vector_store %arg6[%c0_16, %c0_17], %29 {strides = array<i32>} : memref<8x1xf32, #tpu.memory_space<vmem>>, vector<8x1xf32>,
    return
  }
  func.func @transform_0(%arg0: i32) -> (i32, i32) {
    %c0_i32 = arith.constant 0 : i32
    %c0_i32_0 = arith.constant 0 : i32
    return %arg0, %c0_i32 : i32, i32
  }
  func.func @transform_1(%arg0: i32) -> (i32, i32) {
    %c0_i32 = arith.constant 0 : i32
    %c0_i32_0 = arith.constant 0 : i32
    %c0_i32_1 = arith.constant 0 : i32
    return %c0_i32, %c0_i32_0 : i32, i32
  }
  func.func @transform_2(%arg0: i32) -> (i32, i32) {
    %c0_i32 = arith.constant 0 : i32
    %c0_i32_0 = arith.constant 0 : i32
    %c0_i32_1 = arith.constant 0 : i32
    return %c0_i32, %c0_i32_0 : i32, i32
  }
  func.func @transform_3(%arg0: i32) -> (i32, i32) {
    %c0_i32 = arith.constant 0 : i32
    %c0_i32_0 = arith.constant 0 : i32
    %c0_i32_1 = arith.constant 0 : i32
    return %c0_i32, %c0_i32_0 : i32, i32
  }
  func.func @transform_4(%arg0: i32) -> (i32, i32) {
    %c0_i32 = arith.constant 0 : i32
    %c0_i32_0 = arith.constant 0 : i32
    %c0_i32_1 = arith.constant 0 : i32
    return %c0_i32, %c0_i32_0 : i32, i32
  }
  func.func @transform_5(%arg0: i32) -> (i32, i32) {
    %c0_i32 = arith.constant 0 : i32
    %c0_i32_0 = arith.constant 0 : i32
    return %arg0, %c0_i32 : i32, i32
  }
}

</mosaic_0001>

<bundles_post_ra>
// kernel: tpu_custom_call.1
= control target key start
LH: loop header
LB: loop body
LE: loop exit
PB: predicated region body
PF: predicated region fallthrough
CT: control target
= control target key end

     0   :  { %vm73_vm0 = vcmask 261120   ;;  %vm521_vm5 = vcmask 7168   ;;  %s922_s1 = inlined_call_operand.vmem [shape: bf16[32,512], index: 1, kind: input, shape index: {}]   ;;  %s923_s0 = inlined_call_operand.vmem [shape: f32[8,32], index: 0, kind: input, shape index: {}]   ;;  %s924_s3 = inlined_call_operand.vmem [shape: bf16[512,1], index: 3, kind: input, shape index: {}]   ;;  %s925_s2 = inlined_call_operand.vmem [shape: bf16[1,512], index: 2, kind: input, shape index: {}]   ;;  %s926_s4 = inlined_call_operand.<no memory space> [shape: f32[1,1], index: 4, kind: input, shape index: {}]   ;;  %s927_s5 = inlined_call_operand.vmem [shape: f32[8,1], index: 5, kind: output, shape index: {}]  }
   0x1   :  { %v545_v0 = vld [vmem:[%s922_s1 + $0x20] sm:$0xf]  ;;  %v697_v1 = vld [vmem:[%s922_s1 + $0x2c] sm:$0xf0]  ;;  %v695_v2 = vld [vmem:[%s922_s1 + $0x24] sm:$0xf]  ;;  %v10_v61 = vstv %s926_s4 }
   0x2   :  { %v546_v3 = vor.u32 %v697_v1, %v545_v0  ;;  %v547_v4 = vld [vmem:[%s922_s1 + $0x30] sm:$0xf0]  ;;  %v553_v5 = vld [vmem:[%s922_s1 + $0x28] sm:$0xf]  ;;  %v698_v6 = vld [vmem:[%s922_s1 + $0x34] sm:$0xf0] }
   0x3   :  { %v550_v7 = vor.u32 %v695_v2, %v547_v4  ;;  %v554_v8 = vor.u32 %v698_v6, %v553_v5  ;;  %v696_v9 = vld [vmem:[%s922_s1 + $0x2c] sm:$0xf]  ;;  %v555_v10 = vld [vmem:[%s922_s1 + $0x38] sm:$0xf0]  ;;  %v529_v11 = vld [vmem:[%s922_s1] sm:$0xf] }
   0x4   :  { %83 = vmatpush.bf16.msra.mxu0 %v546_v3  ;;  %v558_v12 = vor.u32 %v696_v9, %v555_v10  ;;  %v693_v13 = vld [vmem:[%s922_s1 + $0xc] sm:$0xf0]  ;;  %v691_v14 = vld [vmem:[%s922_s1 + $0x4] sm:$0xf]  ;;  %v531_v15 = vld [vmem:[%s922_s1 + $0x10] sm:$0xf0] }
   0x5   :  { %96 = vmatpush.bf16.msra.mxu1 %v550_v7  ;;  %109 = vmatpush.bf16.msra.mxu2 %v554_v8  ;;  %v530_v16 = vor.u32 %v693_v13, %v529_v11  ;;  %v534_v17 = vor.u32 %v691_v14, %v531_v15  ;;  %v537_v18 = vld [vmem:[%s922_s1 + $0x8] sm:$0xf]  ;;  %v694_v19 = vld [vmem:[%s922_s1 + $0x14] sm:$0xf0]  ;;  %v692_v20 = vld [vmem:[%s922_s1 + $0xc] sm:$0xf] }
   0x6   :  { %122 = vmatpush.bf16.msra.mxu3 %v558_v12  ;;  %v538_v21 = vor.u32 %v694_v19, %v537_v18  ;;  %v539_v22 = vld [vmem:[%s922_s1 + $0x18] sm:$0xf0]  ;;  %v23_v23 = vld [vmem:[%s923_s0] sm:$0xff]  ;;  %v705_v29 = vld [vmem:[%s924_s3 + $0x30] sm:$0xff]  ;;  %11 = vst [vmem:[#allocation2] sm:$0x1] %v10_v61 }
   0x7   :  { %v706_v24 = vld [vmem:[%s924_s3 + $0x38] sm:$0xff]  ;;  %v542_v25 = vor.u32 %v692_v20, %v539_v22  ;;  %v24_v26 = vpack.c.bf16 %v23_v23, %v23_v23  ;;  %v713_v31 = vld [vmem:[%s924_s3 + $0x70] sm:$0xff]  ;;  %v704_v33 = vld [vmem:[%s924_s3 + $0x28] sm:$0xff] }
   0x8   :  { %v714_v27 = vld [vmem:[%s924_s3 + $0x78] sm:$0xff]  ;;  %84 = vmatpush.bf16.msra.mxu0 %v530_v16  ;;  %v721_v32 = vld [vmem:[%s924_s3 + $0xb0] sm:$0xff]  ;;  %v712_v35 = vld [vmem:[%s924_s3 + $0x68] sm:$0xff] }
   0x9   :  { %97 = vmatpush.bf16.msra.mxu1 %v534_v17  ;;  %110 = vmatpush.bf16.msra.mxu2 %v538_v21  ;;  %v722_v28 = vld [vmem:[%s924_s3 + $0xb8] sm:$0xff]  ;;  %v729_v34 = vld [vmem:[%s924_s3 + $0xf0] sm:$0xff]  ;;  %v703_v36 = vld [vmem:[%s924_s3 + $0x20] sm:$0xff] }
   0xa   :  { %123 = vmatpush.bf16.msra.mxu3 %v542_v25  ;;  %v730_v30 = vld [vmem:[%s924_s3 + $0xf8] sm:$0xff]  ;;  %v711_v37 = vld [vmem:[%s924_s3 + $0x60] sm:$0xff]  ;;  %v720_v39 = vld [vmem:[%s924_s3 + $0xa8] sm:$0xff] }
   0xb   :  { %559 = vmatmul.msk.bf16.vlgmr.msra.gmra.mxu0 %vm73_vm0, %v24_v26  ;;  %v131_v38 = vld [vmem:[%s925_s2] sm:$0xf]  ;;  %v728_v40 = vld [vmem:[%s924_s3 + $0xe8] sm:$0xff]  ;;  %v702_v41 = vld [vmem:[%s924_s3 + $0x18] sm:$0xff] }
   0xc   :  { %446 = vmatpush.bf16.msrb.mxu0 %v706_v24  ;;  %560 = vmatmul.msk.bf16.vlgmr.msra.gmra.mxu1 %vm73_vm0, %v24_v26  ;;  %133 = vst [vmem:[#allocation1] ss:$9 sm:$0xff] %v131_v38  ;;  %v710_v42 = vld [vmem:[%s924_s3 + $0x58] sm:$0xff]  ;;  %v719_v43 = vld [vmem:[%s924_s3 + $0xa0] sm:$0xff]  ;;  %v701_v45 = vld [vmem:[%s924_s3 + $0x10] sm:$0xff] }
   0xd   :  { %459 = vmatpush.bf16.msrb.mxu1 %v714_v27  ;;  %561 = vmatmul.msk.bf16.vlgmr.msra.gmra.mxu2 %vm73_vm0, %v24_v26  ;;  %v727_v44 = vld [vmem:[%s924_s3 + $0xe0] sm:$0xff]  ;;  %v709_v46 = vld [vmem:[%s924_s3 + $0x50] sm:$0xff]  ;;  %v718_v47 = vld [vmem:[%s924_s3 + $0x98] sm:$0xff] }
   0xe   :  { %562 = vmatmul.msk.bf16.vlgmr.msra.gmra.mxu3 %vm73_vm0, %v24_v26  ;;  %472 = vmatpush.bf16.msrb.mxu2 %v722_v28  ;;  %v726_v48 = vld [vmem:[%s924_s3 + $0xd8] sm:$0xff]  ;;  %v700_v49 = vld [vmem:[%s924_s3 + $0x8] sm:$0xff]  ;;  %v717_v51 = vld [vmem:[%s924_s3 + $0x90] sm:$0xff] }
   0xf   :  { %485 = vmatpush.bf16.msrb.mxu3 %v730_v30  ;;  %v708_v50 = vld [vmem:[%s924_s3 + $0x48] sm:$0xff]  ;;  %v725_v52 = vld [vmem:[%s924_s3 + $0xd0] sm:$0xff]  ;;  %v699_v53 = vld [vmem:[%s924_s3] sm:$0xff] }
  0x10   :  { %447 = vmatpush.bf16.msrb.mxu0 %v705_v29  ;;  %v707_v54 = vld [vmem:[%s924_s3 + $0x40] sm:$0xff]  ;;  %v716_v55 = vld [vmem:[%s924_s3 + $0x88] sm:$0xff] }
  0x11   :  { %460 = vmatpush.bf16.msrb.mxu1 %v713_v31  ;;  %v724_v56 = vld [vmem:[%s924_s3 + $0xc8] sm:$0xff]  ;;  %v715_v57 = vld [vmem:[%s924_s3 + $0x80] sm:$0xff] }
  0x12   :  { %473 = vmatpush.bf16.msrb.mxu2 %v721_v32  ;;  %v723_v58 = vld [vmem:[%s924_s3 + $0xc0] sm:$0xff] }
  0x13   :  { %486 = vmatpush.bf16.msrb.mxu3 %v729_v34  ;;  %v134_v59 = vld [vmem:[#allocation1] sm:$0xff]  ;;  %v135_v60 = vld [vmem:[#allocation1 + $0x9] sm:$0xff]  ;;  %v136_v2 = vld [vmem:[#allocation1 + $0x12] sm:$0xff] }
  0x14   :  { %448 = vmatpush.bf16.msrb.mxu0 %v704_v33  ;;  %v138_v62 = vpack.i.b16 %v134_v59, %v134_v59  ;;  %v141_v63 = vpack.i.b16 %v135_v60, %v135_v60  ;;  %v137_v3 = vld [vmem:[#allocation1 + $0x1b] sm:$0xff]  ;;  %v144_v6 = vpack.i.b16 %v136_v2, %v136_v2 }
  0x15   :  { %461 = vmatpush.bf16.msrb.mxu1 %v712_v35  ;;  %v147_v7 = vpack.i.b16 %v137_v3, %v137_v3 }
  0x16   :  { %474 = vmatpush.bf16.msrb.mxu2 %v720_v39  ;;  %v140_v0 = vperm.slane %v138_v62, 0  ;;  %v143_v1 = vperm.slane %v141_v63, 0  ;;  %v146_v13 = vperm.slane %v144_v6, 0 }
  0x17   :  { %487 = vmatpush.bf16.msrb.mxu3 %v728_v40  ;;  %v149_v14 = vperm.slane %v147_v7, 0 }
  0x18   :  { %449 = vmatpush.bf16.msrb.mxu0 %v703_v36  ;;  %v154_v9 = vunpack.c.l.bf16 %v140_v0  ;;  %v155_v10 = vunpack.c.l.bf16 %v143_v1  ;;  %v156_v22 = vunpack.c.l.bf16 %v146_v13 }
  0x19   :  { %462 = vmatpush.bf16.msrb.mxu1 %v711_v37  ;;  %v157_v23 = vunpack.c.l.bf16 %v149_v14 }
  0x1a   :  { %475 = vmatpush.bf16.msrb.mxu2 %v719_v43 }
  0x1b   :  { %488 = vmatpush.bf16.msrb.mxu3 %v727_v44 }
  0x1c   :  { %450 = vmatpush.bf16.msrb.mxu0 %v702_v41 }
  0x1d   :  { %463 = vmatpush.bf16.msrb.mxu1 %v710_v42 }
  0x1e   :  { %476 = vmatpush.bf16.msrb.mxu2 %v718_v47 }
  0x1f   :  { %489 = vmatpush.bf16.msrb.mxu3 %v726_v48 }
  0x20   :  { %451 = vmatpush.bf16.msrb.mxu0 %v701_v45 }
  0x21   :  { %464 = vmatpush.bf16.msrb.mxu1 %v709_v46 }
  0x22   :  { %477 = vmatpush.bf16.msrb.mxu2 %v717_v51 }
  0x23   :  { %490 = vmatpush.bf16.msrb.mxu3 %v725_v52 }
  0x24   :  { %452 = vmatpush.bf16.msrb.mxu0 %v700_v49 }
  0x25   :  { %465 = vmatpush.bf16.msrb.mxu1 %v708_v50  ;;  %v731_v50 = vld [vmem:[#allocation2] ss:$0 sm:$0xff] }
  0x26   :  { %478 = vmatpush.bf16.msrb.mxu2 %v716_v55 }
  0x27   :  { %491 = vmatpush.bf16.msrb.mxu3 %v724_v56 }
  0x28   :  { %453 = vmatpush.bf16.msrb.mxu0 %v699_v53 }
  0x29   :  { %466 = vmatpush.bf16.msrb.mxu1 %v707_v54 }
  0x2a   :  { %479 = vmatpush.bf16.msrb.mxu2 %v715_v57 }
  0x2b   :  { %492 = vmatpush.bf16.msrb.mxu3 %v723_v58 }
  0x88   :  { %v86_v4 = vpop.f32.mrf.mxu0 }
  0x89   :  { %v99_v5 = vpop.f32.mrf.mxu1 }
  0x8a   :  { %v129_v8 = vpack.c.bf16 %v99_v5, %v86_v4 }
  0x8c   :  { %v150_v11 = vunpack.c.l.bf16 %v129_v8  ;;  %v151_v12 = vunpack.c.h.bf16 %v129_v8 }
  0x8e   :  { %v158_v15 = vadd.f32 %v154_v9, %v150_v11  ;;  %v159_v16 = vadd.f32 %v155_v10, %v151_v12 }
  0x90   :  { %v112_v17 = vpop.f32.mrf.mxu2  ;;  %v162_v18 = vpack.c.bf16 %v159_v16, %v158_v15  ;;  %v88_v20 = vpop.f32.mrf.mxu0 }
  0x91   :  { %v125_v19 = vpop.f32.mrf.mxu3  ;;  %v101_v24 = vpop.f32.mrf.mxu1 }
  0x92   :  { %v130_v21 = vpack.c.bf16 %v125_v19, %v112_v17  ;;  %v164_v25 = vunpack.c.l.bf16 %v162_v18  ;;  %v165_v26 = vunpack.c.h.bf16 %v162_v18 }
  0x94   :  { %v152_v27 = vunpack.c.l.bf16 %v130_v21  ;;  %v153_v28 = vunpack.c.h.bf16 %v130_v21  ;;  %v168_v29 = vmul.f32 0.100097656, %v164_v25  ;;  %v169_v30 = vmul.f32 0.100097656, %v165_v26 }
  0x96   :  { %v160_v31 = vadd.f32 %v156_v22, %v152_v27  ;;  %v161_v32 = vadd.f32 %v157_v23, %v153_v28  ;;  %v178_v33 = vmax.f32 %v164_v25, %v168_v29  ;;  %v179_v34 = vmax.f32 %v165_v26, %v169_v30 }
  0x98   :  { %v163_v35 = vpack.c.bf16 %v161_v32, %v160_v31  ;;  %v114_v36 = vpop.f32.mrf.mxu2  ;;  %v182_v38 = vpack.c.bf16 %v178_v33, %v178_v33  ;;  %v183_v39 = vpack.c.bf16 %v179_v34, %v179_v34 }
  0x99   :  { %v127_v37 = vpop.f32.mrf.mxu3 }
  0x9a   :  { %v166_v40 = vunpack.c.l.bf16 %v163_v35  ;;  %v167_v41 = vunpack.c.h.bf16 %v163_v35  ;;  %454 = vmatmul.bf16.vlgmr.msrb.gmra.mxu0 %v182_v38  ;;  %467 = vmatmul.bf16.vlgmr.msrb.gmra.mxu1 %v183_v39 }
  0x9c   :  { %v170_v42 = vmul.f32 0.100097656, %v166_v40  ;;  %v171_v43 = vmul.f32 0.100097656, %v167_v41 }
  0x9e   :  { %v180_v44 = vmax.f32 %v166_v40, %v170_v42  ;;  %v181_v45 = vmax.f32 %v167_v41, %v171_v43 }
  0xa0   :  { %v184_v46 = vpack.c.bf16 %v180_v44, %v180_v44  ;;  %v185_v47 = vpack.c.bf16 %v181_v45, %v181_v45 }
  0xa2   :  { %480 = vmatmul.bf16.vlgmr.msrb.gmra.mxu2 %v184_v46  ;;  %493 = vmatmul.bf16.vlgmr.msrb.gmra.mxu3 %v185_v47 }
 0x117   :  { %v455_v48 = vpop.f32.mrf.mxu0  ;;  %v468_v49 = vpop.f32.mrf.mxu1 }
 0x118   :  { %v456_v51 = vadd.f32 %v731_v50, %v455_v48 }
 0x11a   :  { %v469_v54 = vadd.f32 %v468_v49, %v456_v51 }
 0x11f   :  { %v457_v52 = vpop.f32.mrf.mxu0  ;;  %v470_v53 = vpop.f32.mrf.mxu1 }
 0x125   :  { %v481_v55 = vpop.f32.mrf.mxu2  ;;  %v494_v56 = vpop.f32.mrf.mxu3 }
 0x126   :  { %v482_v57 = vadd.f32 %v481_v55, %v469_v54 }
 0x128   :  { %v495_v58 = vadd.f32 %v494_v56, %v482_v57 }
 0x12a   :  { %v498_v59 = vand.u32 2147483647, %v495_v58  ;;  %vm502_vm6 = vcmp.ge.f32.partialorder %v495_v58, 0.0 }
 0x12c   :  { %v499_v60 = vsub.f32 0.0, %v498_v59 }
 0x12d   :  { %v483_v61 = vpop.f32.mrf.mxu2  ;;  %v496_v62 = vpop.f32.mrf.mxu3 }
 0x12e   :  { %v500_v63 = vmul.f32 1.442695, %v499_v60 }
 0x130   :  { %732 = vpow2.f32 %v500_v63 }
 0x136   :  { %v733_v0 = vpop.eup %732 }
 0x137   :  { %v503_v1 = vadd.f32 1.0, %v733_v0 }
 0x139   :  { %734 = vrcp.f32 %v503_v1  ;;  %v515_v5 = vand.u32 2147483648, %v503_v1  ;;  %v513_v7 = vand.u32 2147483647, %v503_v1  ;;  %vm509_vm2 = vweird.f32 %v503_v1 }
 0x13b   :  { %v516_v9 = vor.u32 1.1754944e-38, %v515_v5  ;;  %vm514_vm4 = vcmp.eq.f32.partialorder %v513_v7, 8.507059e+37 }
 0x13f   :  { %v735_v2 = vpop.eup %734 }
 0x140   :  { %v505_v3 = vmul.f32 %v735_v2, %v503_v1  ;;  %vm510_vm1 = vweird.f32 %v735_v2 }
 0x141   :  { %vm511_vm3 = vmor %vm509_vm2, %vm510_vm1 }
 0x142   :  { %v506_v4 = vsub.f32 1.0, %v505_v3 }
 0x144   :  { %v507_v6 = vmul.f32 %v735_v2, %v506_v4 }
 0x146   :  { %v508_v8 = vadd.f32 %v735_v2, %v507_v6 }
 0x148   :  { %v512_v10 = vsel %vm511_vm3, %v735_v2, %v508_v8 }
 0x149   :  { %v517_v11 = vsel %vm514_vm4, %v516_v9, %v512_v10 }
 0x14a   :  { %v519_v12 = vmul.f32 %v733_v0, %v517_v11 }
 0x14c   :  { %v520_v13 = vsel %vm502_vm6, %v517_v11, %v519_v12 }
 0x14d   :  { %522 = vst.msk [vmem:[%s927_s5] sm:$0xff] %vm521_vm5, %v520_v13 }

</bundles_post_ra>
